<compile_context>
chip_gen: v7x
topology: tpu7x:2x2x1
jax: 0.10.0
libtpu: 0.0.40
codegen_flags: <defaults>
</compile_context>

<pallas_src>
import functools

import jax
import jax.numpy as jnp
from jax.experimental import pallas as pl
from jax.experimental.pallas import tpu as pltpu


_LANE = 128


# -----------------------------------------------------------------------------
# Generation-aware VMEM budgets
# -----------------------------------------------------------------------------
def _vmem_capacity_bytes():
    try:
        cap = int(pltpu.get_tpu_info().vmem_capacity_bytes)
        if cap > 0:
            return cap
    except Exception:
        pass
    return 64 * 1024 * 1024  # conservative fallback (v7x-sized)


def _vmem_budgets():
    """Returns (planning_budget, vmem_limit_bytes, likely_two_tensorcores)."""
    cap = _vmem_capacity_bytes()
    if cap <= 64 * 1024 * 1024:
        # v7x-class: 64 MiB VMEM/TC, 2 TensorCores per chip. Leave headroom for
        # Mosaic internal scratch + I/O double buffers.
        return 44 * 1024 * 1024, 52 * 1024 * 1024, True
    # v5e / v6e: 128 MiB VMEM, single TensorCore.
    return 96 * 1024 * 1024, 108 * 1024 * 1024, False


# -----------------------------------------------------------------------------
# Kernels
# -----------------------------------------------------------------------------
def _classifier_kernel(x_ref, w1_ref, b1_ref, w2_ref, b2_ref, o_ref):
    """Fused MLP tile (resident-weight path).

    x_ref : [TB, D]   f32  (batch tile; cast to bf16 in-kernel)
    w1_ref: [D,  D]   bf16 (resident, [in, out] layout, single-buffered)
    b1_ref: [1,  D]   f32
    w2_ref: [D,  Cp]  bf16 (resident, [in, out], Cp = 128-padded, single-buffered)
    b2_ref: [1,  Cp]  f32
    o_ref : [TB, C]   f32  (narrow output; only real class columns leave VMEM)
    """
    x = x_ref[...].astype(jnp.bfloat16)        # VPU cast, hides under MXU/DMA
    h = jnp.dot(x, w1_ref[...], preferred_element_type=jnp.float32)
    # Bias + ReLU epilogue in f32 (v5e VPU has no bf16 path).
    h = jnp.maximum(h + b1_ref[...], 0.0)
    # TODO(synk): Dropout(p=0.1) is identity in eval/inference; no RNG mask applied.
    y = jnp.dot(h.astype(jnp.bfloat16), w2_ref[...],
                preferred_element_type=jnp.float32) + b2_ref[...]
    # Narrow writeback: slice the lane-dense result down to the real classes.
    o_ref[...] = y[:, :o_ref.shape[1]]


def _classifier_kernel_ktiled(x_ref, w1_ref, b1_ref, w2_ref, b2_ref, o_ref,
                              h_acc):
    """K-tiled (over D) variant for large D where resident W1 does not fit VMEM.

    grid = (B tiles, D // block_k); reduction axis last, accumulator scratch.
    x_ref : [TB, TK] f32,  w1_ref: [TK, D] bf16 (streamed row blocks)
    h_acc : [TB, D]  f32 scratch, persists across the k axis.
    """
    k = pl.program_id(1)

    @pl.when(k == 0)
    def _():
        h_acc[...] = jnp.zeros_like(h_acc)

    h_acc[...] += jnp.dot(x_ref[...].astype(jnp.bfloat16), w1_ref[...],
                          preferred_element_type=jnp.float32)

    @pl.when(k == pl.num_programs(1) - 1)
    def _():
        h = jnp.maximum(h_acc[...] + b1_ref[...], 0.0)
        y = jnp.dot(h.astype(jnp.bfloat16), w2_ref[...],
                    preferred_element_type=jnp.float32) + b2_ref[...]
        o_ref[...] = y[:, :o_ref.shape[1]]


# -----------------------------------------------------------------------------
# Tiling heuristics
# -----------------------------------------------------------------------------
def _plan_resident(B, D, C, C_pad, plan_budget, two_cores):
    """Pick block_b for the resident-weight path, or None if W1/W2 don't fit."""
    bf16, f32 = 2, 4
    # Resident weights/biases are single-buffered (pl.Buffered(1)).
    fixed = (D * D + D * C_pad) * bf16 + (D + C_pad) * f32
    # Per batch-row: f32 x tile (2 bufs) + narrow f32 out tile (2 bufs)
    # + in-kernel intermediates (h f32, h bf16 cast, y f32).
    per_row = (2 * D * f32 + 2 * C * f32 + D * f32 + D * bf16 + C_pad * f32)
    avail = plan_budget - fixed
    if avail < 16 * per_row:
        return None  # resident weights don't fit -> K-tiled / XLA path
    cap = int(avail // per_row)
    if B <= cap:
        if two_cores and B % 512 == 0:
            # Even 2-step grid so both v7x TensorCores get equal tiles.
            return B // 2
        return B
    # Tiled: align to the MXU width (256 on v6e/v7x, 128 on v5e) so edge tiles
    # aren't ragged; fall back to 16 (bf16 sublane packing) for tiny budgets.
    if cap >= 256:
        return (cap // 256) * 256
    if cap >= 128:
        return 128
    return max(16, (cap // 16) * 16)


def _plan_ktiled(B, D, C, C_pad, plan_budget):
    """Pick (block_b, block_k) for the K-tiled path, or None if unusable."""
    if D % _LANE:
        return None
    bf16, f32 = 2, 4
    block_b = min(B, 256)
    if block_b < B and block_b % 16:
        block_b = max(16, (block_b // 16) * 16)
    fixed = (D * C_pad) * bf16 + (D + C_pad) * f32          # resident W2/b1/b2
    fixed += block_b * D * (f32 + bf16)                      # h_acc + bf16 h
    fixed += 2 * block_b * C * f32 + block_b * C_pad * f32   # out bufs + y
    avail = plan_budget - fixed
    if avail <= 0:
        return None
    per_k = 2 * D * bf16 + 2 * block_b * f32  # W1 row (2 bufs) + x col (2 bufs)
    max_k = int(avail // per_k)
    block_k = 0
    for cand in range((min(max_k, D) // _LANE) * _LANE, 0, -_LANE):
        if D % cand == 0:
            block_k = cand
            break
    if block_k == 0:
        return None
    return block_b, block_k


# -----------------------------------------------------------------------------
# Parameter prep (one-time, outside jit): transpose to [in, out], pad class
# dim to a lane-dense multiple of 128, cast weights to bf16.
# -----------------------------------------------------------------------------
def prepare_classifier_params(w1, b1, w2, b2):
    """w1: [D, D] (PyTorch [out, in]), b1: [D], w2: [C, D], b2: [C]."""
    D = w1.shape[1]
    C = w2.shape[0]
    C_pad = ((max(C, 1) + _LANE - 1) // _LANE) * _LANE

    w1_t = jnp.asarray(w1, jnp.float32).T.astype(jnp.bfloat16)           # [D, D]
    w2_in_out = jnp.asarray(w2, jnp.float32).T.astype(jnp.bfloat16)      # [D, C]
    w2_t = jnp.zeros((D, C_pad), jnp.bfloat16).at[:, :C].set(w2_in_out)  # [D, Cp]
    b1_r = jnp.asarray(b1, jnp.float32).reshape(1, D)
    b2_r = jnp.zeros((1, C_pad), jnp.float32).at[0, :C].set(
        jnp.asarray(b2, jnp.float32))
    return w1_t, b1_r, w2_t, b2_r, C


# -----------------------------------------------------------------------------
# Forward passes
# -----------------------------------------------------------------------------
@functools.partial(jax.jit, static_argnames=("C", "block_b", "vmem_limit"))
def _forward_resident(x, w1_t, b1_r, w2_t, b2_r, *, C, block_b, vmem_limit):
    B, D = x.shape
    C_pad = w2_t.shape[1]
    resident = functools.partial(pl.BlockSpec, pipeline_mode=pl.Buffered(1))
    return pl.pallas_call(
        _classifier_kernel,
        out_shape=jax.ShapeDtypeStruct((B, C), jnp.float32),
        grid_spec=pltpu.PrefetchScalarGridSpec(
            num_scalar_prefetch=0,
            grid=(pl.cdiv(B, block_b),),
            in_specs=[
                pl.BlockSpec((block_b, D), lambda i: (i, 0)),       # x tile (f32)
                resident((D, D), lambda i: (0, 0)),                 # W1 resident
                resident((1, D), lambda i: (0, 0)),                 # b1
                resident((D, C_pad), lambda i: (0, 0)),             # W2 resident
                resident((1, C_pad), lambda i: (0, 0)),             # b2
            ],
            out_specs=pl.BlockSpec((block_b, C), lambda i: (i, 0)),  # narrow out
        ),
        compiler_params=pltpu.CompilerParams(
            dimension_semantics=("parallel",),
            vmem_limit_bytes=vmem_limit,
        ),
    )(x, w1_t, b1_r, w2_t, b2_r)


@functools.partial(jax.jit,
                   static_argnames=("C", "block_b", "block_k", "vmem_limit"))
def _forward_ktiled(x, w1_t, b1_r, w2_t, b2_r, *, C, block_b, block_k,
                    vmem_limit):
    B, D = x.shape
    C_pad = w2_t.shape[1]
    resident = functools.partial(pl.BlockSpec, pipeline_mode=pl.Buffered(1))
    return pl.pallas_call(
        _classifier_kernel_ktiled,
        out_shape=jax.ShapeDtypeStruct((B, C), jnp.float32),
        grid_spec=pltpu.PrefetchScalarGridSpec(
            num_scalar_prefetch=0,
            grid=(pl.cdiv(B, block_b), D // block_k),
            in_specs=[
                pl.BlockSpec((block_b, block_k), lambda i, k: (i, k)),  # x
                pl.BlockSpec((block_k, D), lambda i, k: (k, 0)),        # W1 rows
                resident((1, D), lambda i, k: (0, 0)),                  # b1
                resident((D, C_pad), lambda i, k: (0, 0)),              # W2
                resident((1, C_pad), lambda i, k: (0, 0)),              # b2
            ],
            out_specs=pl.BlockSpec((block_b, C), lambda i, k: (i, 0)),
            scratch_shapes=[pltpu.VMEM((block_b, D), jnp.float32)],
        ),
        compiler_params=pltpu.CompilerParams(
            dimension_semantics=("parallel", "arbitrary"),
            vmem_limit_bytes=vmem_limit,
        ),
    )(x, w1_t, b1_r, w2_t, b2_r)


@functools.partial(jax.jit, static_argnames=("C",))
def _forward_xla(x, w1_t, b1_r, w2_t, b2_r, *, C):
    h = jnp.maximum(
        jnp.dot(x.astype(jnp.bfloat16), w1_t,
                preferred_element_type=jnp.float32) + b1_r, 0.0)
    y = jnp.dot(h.astype(jnp.bfloat16), w2_t,
                preferred_element_type=jnp.float32) + b2_r
    return y[:, :C]


def classifier_forward(x, params, *, block_b=None, use_pallas=None):
    """x: [B, D] f32.  params from prepare_classifier_params().  Returns [B, C]."""
    w1_t, b1_r, w2_t, b2_r, C = params
    B, D = x.shape
    C_pad = w2_t.shape[1]
    plan_budget, vmem_limit, two_cores = _vmem_budgets()

    if use_pallas is None:
        # Per review: below D~512 the per-grid-step overhead beats the MXU win,
        # so fused XLA matches/beats the kernel.
        use_pallas = (B >= 1024) and (D >= 512)
    if not use_pallas:
        return _forward_xla(x, w1_t, b1_r, w2_t, b2_r, C=C)

    x = x.astype(jnp.float32)

    if block_b is not None:
        bb = int(block_b)
    else:
        bb = _plan_resident(B, D, C, C_pad, plan_budget, two_cores)

    if bb is not None:
        bb = int(min(bb, B))
        if bb < B and bb % 8:
            bb = max(8, (bb // 8) * 8)
        return _forward_resident(x, w1_t, b1_r, w2_t, b2_r,
                                 C=C, block_b=bb, vmem_limit=vmem_limit)

    plan = _plan_ktiled(B, D, C, C_pad, plan_budget)
    if plan is not None:
        kb, kk = plan
        return _forward_ktiled(x, w1_t, b1_r, w2_t, b2_r,
                               C=C, block_b=kb, block_k=kk,
                               vmem_limit=vmem_limit)

    return _forward_xla(x, w1_t, b1_r, w2_t, b2_r, C=C)


# -----------------------------------------------------------------------------
# Init (matches Classifier.reset_parameter) and reference
# -----------------------------------------------------------------------------
def kaiming_uniform(key, shape, fan_in):
    # nn.init.kaiming_uniform_(p, a=0, mode='fan_in', nonlinearity='relu'):
    # gain = sqrt(2), bound = gain * sqrt(3 / fan_in)
    bound = jnp.sqrt(2.0) * jnp.sqrt(3.0 / fan_in)
    return jax.random.uniform(key, shape, jnp.float32, -bound, bound)


def init_classifier_params(key, input_dim, class_num=1):
    k1, k2 = jax.random.split(key)
    # PyTorch Linear weight layout: [out_features, in_features].
    w1 = kaiming_uniform(k1, (input_dim, input_dim), fan_in=input_dim)
    b1 = jnp.zeros((input_dim,), jnp.float32)
    w2 = kaiming_uniform(k2, (class_num, input_dim), fan_in=input_dim)
    b2 = jnp.zeros((class_num,), jnp.float32)
    return w1, b1, w2, b2


def reference_forward_bf16(x, w1, b1, w2, b2):
    """Reference with the same bf16 quantization points as the kernel."""
    w1_t = w1.T.astype(jnp.bfloat16)
    w2_t = w2.T.astype(jnp.bfloat16)
    h = jnp.maximum(
        jnp.dot(x.astype(jnp.bfloat16), w1_t,
                preferred_element_type=jnp.float32) + b1, 0.0)
    return jnp.dot(h.astype(jnp.bfloat16), w2_t,
                   preferred_element_type=jnp.float32) + b2


# -----------------------------------------------------------------------------
if __name__ == "__main__":
    B, D, C = 512, 256, 1   # batch, input_dim, class_num (small demo shapes)

    key = jax.random.PRNGKey(0)
    kx, kp = jax.random.split(key)
    x = jax.random.normal(kx, (B, D), jnp.float32)
    w1, b1, w2, b2 = init_classifier_params(kp, D, C)

    # One-time parameter prep (transpose / pad / bf16 cast) outside the forward.
    params = prepare_classifier_params(w1, b1, w2, b2)
    w1_t, b1_r, w2_t, b2_r, _ = params

    ref = reference_forward_bf16(x, w1, b1, w2, b2)

    # Force the Pallas path so the resident-weight kernel runs at these demo
    # shapes (the auto-gate would route shapes this small to plain XLA).
    out = classifier_forward(x, params, use_pallas=True)
    out = jax.block_until_ready(out)
    assert out.shape == (B, C), out.shape
    assert jnp.allclose(out, ref, atol=1e-2, rtol=1e-2), (
        f"resident path max abs err = {jnp.max(jnp.abs(out - ref))}")

    # Also exercise the K-tiled (over D) path with forced small tiles.
    _, vmem_limit, _ = _vmem_budgets()
    out_k = _forward_ktiled(x, w1_t, b1_r, w2_t, b2_r,
                            C=C, block_b=256, block_k=128,
                            vmem_limit=vmem_limit)
    out_k = jax.block_until_ready(out_k)
    assert out_k.shape == (B, C), out_k.shape
    assert jnp.allclose(out_k, ref, atol=1e-2, rtol=1e-2), (
        f"k-tiled path max abs err = {jnp.max(jnp.abs(out_k - ref))}")

    print("KERNEL_OK")
</pallas_src>

<mosaic_0001>
module attributes {stable_mosaic.version = 11 : i64} {
  func.func @_classifier_kernel(%arg0: i32, %arg1: memref<256x256xf32, #tpu.memory_space<vmem>>, %arg2: memref<256x256xbf16, #tpu.memory_space<vmem>>, %arg3: memref<1x256xf32, #tpu.memory_space<vmem>>, %arg4: memref<256x128xbf16, #tpu.memory_space<vmem>>, %arg5: memref<1x128xf32, #tpu.memory_space<vmem>>, %arg6: memref<256x1xf32, #tpu.memory_space<vmem>>) attributes {dimension_semantics = [#tpu.dimension_semantics<parallel>], iteration_bounds = array<i64: 2>, scalar_prefetch = 0 : i64, scratch_operands = 0 : i64, tpu.core_type = #tpu.core_type<tc>, window_params = [{transform_indices = @transform_0, window_bounds = array<i64: 256, 256>}, {pipeline_mode = #tpu.pipeline_mode<synchronous>, transform_indices = @transform_1, window_bounds = array<i64: 256, 256>}, {pipeline_mode = #tpu.pipeline_mode<synchronous>, transform_indices = @transform_2, window_bounds = array<i64: 1, 256>}, {pipeline_mode = #tpu.pipeline_mode<synchronous>, transform_indices = @transform_3, window_bounds = array<i64: 256, 128>}, {pipeline_mode = #tpu.pipeline_mode<synchronous>, transform_indices = @transform_4, window_bounds = array<i64: 1, 128>}, {transform_indices = @transform_5, window_bounds = array<i64: 256, 1>}]} {
    %c0 = arith.constant 0 : index
    %c0_0 = arith.constant 0 : index
    %0 = vector.load %arg1[%c0, %c0_0] : memref<256x256xf32, #tpu.memory_space<vmem>>, vector<256x256xf32>
    %1 = arith.truncf %0 : vector<256x256xf32> to vector<256x256xbf16>
    %c0_1 = arith.constant 0 : index
    %c0_2 = arith.constant 0 : index
    %2 = vector.load %arg2[%c0_1, %c0_2] : memref<256x256xbf16, #tpu.memory_space<vmem>>, vector<256x256xbf16>
    %cst = arith.constant dense<0.000000e+00> : vector<256x256xf32>
    %3 = tpu.matmul %1, %2, %cst {dimension_numbers = #tpu.dot_dimension_numbers<[1], [0], [0], [1], [0, 0, 1, 1], [], []>} : vector<256x256xbf16>, vector<256x256xbf16>, vector<256x256xf32> -> vector<256x256xf32>
    %c0_3 = arith.constant 0 : index
    %c0_4 = arith.constant 0 : index
    %4 = vector.load %arg3[%c0_3, %c0_4] : memref<1x256xf32, #tpu.memory_space<vmem>>, vector<1x256xf32>
    %5 = vector.broadcast %4 : vector<1x256xf32> to vector<256x256xf32>
    %6 = arith.addf %3, %5 : vector<256x256xf32>
    %cst_5 = arith.constant 0.000000e+00 : f32
    %7 = vector.broadcast %cst_5 : f32 to vector<256x256xf32>
    %8 = arith.maximumf %6, %7 : vector<256x256xf32>
    %9 = arith.truncf %8 : vector<256x256xf32> to vector<256x256xbf16>
    %c0_6 = arith.constant 0 : index
    %c0_7 = arith.constant 0 : index
    %10 = vector.load %arg4[%c0_6, %c0_7] : memref<256x128xbf16, #tpu.memory_space<vmem>>, vector<256x128xbf16>
    %cst_8 = arith.constant dense<0.000000e+00> : vector<256x128xf32>
    %11 = tpu.matmul %9, %10, %cst_8 {dimension_numbers = #tpu.dot_dimension_numbers<[1], [0], [0], [1], [0, 0, 1, 1], [], []>} : vector<256x256xbf16>, vector<256x128xbf16>, vector<256x128xf32> -> vector<256x128xf32>
    %c0_9 = arith.constant 0 : index
    %c0_10 = arith.constant 0 : index
    %12 = vector.load %arg5[%c0_9, %c0_10] : memref<1x128xf32, #tpu.memory_space<vmem>>, vector<1x128xf32>
    %13 = vector.broadcast %12 : vector<1x128xf32> to vector<256x128xf32>
    %14 = arith.addf %11, %13 : vector<256x128xf32>
    %15 = vector.extract_strided_slice %14 {offsets = [0, 0], sizes = [256, 1], strides = [1, 1]} : vector<256x128xf32> to vector<256x1xf32>
    %c0_11 = arith.constant 0 : index
    %c0_12 = arith.constant 0 : index
    %16 = vector.load %arg6[%c0_11, %c0_12] : memref<256x1xf32, #tpu.memory_space<vmem>>, vector<256x1xf32>
    tpu.vector_store %arg6[%c0_11, %c0_12], %15 {strides = array<i32>} : memref<256x1xf32, #tpu.memory_space<vmem>>, vector<256x1xf32>,
    return
  }
  func.func @transform_0(%arg0: i32) -> (i32, i32) {
    %c0_i32 = arith.constant 0 : i32
    %c0_i32_0 = arith.constant 0 : i32
    return %arg0, %c0_i32 : i32, i32
  }
  func.func @transform_1(%arg0: i32) -> (i32, i32) {
    %c0_i32 = arith.constant 0 : i32
    %c0_i32_0 = arith.constant 0 : i32
    %c0_i32_1 = arith.constant 0 : i32
    return %c0_i32, %c0_i32_0 : i32, i32
  }
  func.func @transform_2(%arg0: i32) -> (i32, i32) {
    %c0_i32 = arith.constant 0 : i32
    %c0_i32_0 = arith.constant 0 : i32
    %c0_i32_1 = arith.constant 0 : i32
    return %c0_i32, %c0_i32_0 : i32, i32
  }
  func.func @transform_3(%arg0: i32) -> (i32, i32) {
    %c0_i32 = arith.constant 0 : i32
    %c0_i32_0 = arith.constant 0 : i32
    %c0_i32_1 = arith.constant 0 : i32
    return %c0_i32, %c0_i32_0 : i32, i32
  }
  func.func @transform_4(%arg0: i32) -> (i32, i32) {
    %c0_i32 = arith.constant 0 : i32
    %c0_i32_0 = arith.constant 0 : i32
    %c0_i32_1 = arith.constant 0 : i32
    return %c0_i32, %c0_i32_0 : i32, i32
  }
  func.func @transform_5(%arg0: i32) -> (i32, i32) {
    %c0_i32 = arith.constant 0 : i32
    %c0_i32_0 = arith.constant 0 : i32
    return %arg0, %c0_i32 : i32, i32
  }
}

</mosaic_0001>

<bundles_post_ra>
// kernel: _forward_resident.1
= control target key start
LH: loop header
LB: loop body
LE: loop exit
PB: predicated region body
PF: predicated region fallthrough
CT: control target
= control target key end

     0   :  { %10 = vsyncpa [#allocation3], 0  ;;  %s2176_s0 = inlined_call_operand.hbm [shape: f32[512,256], index: 0, kind: input, shape index: {}]   ;;  %s2177_s1 = inlined_call_operand.hbm [shape: bf16[256,256], index: 1, kind: input, shape index: {}]   ;;  %s2178_s2 = inlined_call_operand.vmem [shape: f32[1,256], index: 2, kind: input, shape index: {}]   ;;  %s2179_s3 = inlined_call_operand.hbm [shape: bf16[256,128], index: 3, kind: input, shape index: {}]   ;;  %s2180_s4 = inlined_call_operand.vmem [shape: f32[1,128], index: 4, kind: input, shape index: {}]   ;;  %s2181_s5 = inlined_call_operand.vmem [shape: f32[512,1], index: 5, kind: output, shape index: {}]  }
   0x1   :  { %12 = vsyncpa [#allocation3 + $0x1], 0 }
   0x2   :  { %13 = vsyncpa [#allocation5], 0  ;;  %s1758_s18 = smov 0   ;;  %s1760_s19 = smov 0  }
   0x3   :  { %s1762_s20 = smov 0   ;;  %s1764_s21 = smov 0  }
   0x4 LB: > { %s1282_s22 = sadd.s32 4294967295, %s1717_s21   ;;  %p39_p0 = scmp.ne.s32.totalorder %s1709_s19, %s1705_s18  ;;  %s1717_s21 = sphi %s1764_s21, %s2197_s21   ;;  %s1713_s20 = sphi %s1762_s20, %s2196_s20   ;;  %s1709_s19 = sphi %s1760_s19, %s2195_s19   ;;  %s1705_s18 = sphi %s1758_s18, %s2194_s18  }
   0x5   : > { %p1780_p1 = scmp.eq.s32.totalorder %s1282_s22, 0  ;;  %p1284_p2 = scmp.ge.s32.totalorder %s1717_s21, 1 }
   0x6   : > { %p160_p3 = scmp.lt.s32.totalorder %s1717_s21, 3  ;;  %s1719_s26 = smov [#allocation4]  }
   0x7   : > { %s2186_s23 = scalar_select %p1780_p1, 1, 0 }
   0x8   : > { %p1788_p4 = por %p1780_p1, %p39_p0  ;;  %p1792_p5 = pnand %p1284_p2, %p160_p3 }
   0x9   : > { %s172_s27 = sshll.u32 %s1719_s26, 4  ;;  %s1720_s29 = smov [#allocation6]   ;;  %s173_s27 = int_to_ptr.vmem [resolvable:$true] %s172_s27 }
   0xa   : > { %s2187_s24 = scalar_select %p1788_p4, 1, 0 }
   0xb   : > { %s2188_s25 = scalar_select %p1792_p5, 1, 0 }
   0xc   : > { %p1473_p6 = pneg %p1792_p5  ;;  %s188_s30 = sshll.u32 %s1720_s29, 4  ;;  %s1804_s30 = int_to_ptr.vmem [resolvable:$true] %s188_s30 }
   0xd   : > { %s1593_s8 = scalar_lea.hbm %s2177_s1, 4096 }
   0xe   : > { %p1800_p7 = pnand %p1473_p6, %p1780_p1  ;;  %p1594_p8 = scmp.ne.s32.totalorder %s2177_s1, %s1593_s8 }
   0xf   : > { %p1600_p12 = scmp.lt.u32.totalorder %s1593_s8, %s2177_s1 }
  0x10   : > { %p1595_p9 = pneg %p1800_p7 }
  0x12   : > { %p1596_p10 = pnand %p1595_p9, %p1594_p8 }
  0x14   : > { %p1597_p11 = pneg %p1596_p10 }
  0x16   : > { %p1602_p13 = pnand %p1600_p12, %p1597_p11 }
  0x18   : > { %1605 = shalt.err (!%p1602_p13)
}
  0x19   : > { %s1606_s13 = scalar_lea.vmem %s173_s27, 4096  ;;  %p1614_p6 = scmp.lt.s32.totalorder %s173_s27, %s173_s27 }
  0x1a   : > { %p1607_p0 = scmp.ne.s32.totalorder %s173_s27, %s1606_s13  ;;  %p1615_p1 = scmp.lt.s32.totalorder %s1606_s13, %s1606_s13 }
  0x1c   : > { %p1609_p2 = pnand %p1607_p0, %p1595_p9  ;;  %p1616_p4 = por %p1615_p1, %p1614_p6 }
  0x1e   : > { %p1610_p3 = pneg %p1609_p2 }
  0x20   : > { %p1617_p5 = pnand %p1616_p4, %p1610_p3 }
  0x22   : > { %1620 = shalt.err (!%p1617_p5)
}
  0x23   : > { %s1721_s14 = smov 128   ;;  %s1722_s15 = smov 8  }
  0x24   : > { %1476 = dma.hbm_to_vmem [thread:$0]  (!%p1800_p7), %s2177_s1, 4096, %s173_s27, [#allocation5], %s1721_s14, %s1721_s14, %s1722_s15  }
  0x25   : > { %s1621_s29 = scalar_lea.hbm %s2179_s3, 2048 }
  0x26   : > { %p1622_p8 = scmp.ne.s32.totalorder %s2179_s3, %s1621_s29  ;;  %p1628_p5 = scmp.lt.u32.totalorder %s1621_s29, %s2179_s3 }
  0x28   : > { %p1624_p1 = pnand %p1622_p8, %p1595_p9 }
  0x2a   : > { %p1625_p4 = pneg %p1624_p1 }
  0x2c   : > { %p1630_p10 = pnand %p1628_p5, %p1625_p4 }
  0x2e   : > { %1633 = shalt.err (!%p1630_p10)
}
  0x2f   : > { %s1634_s27 = scalar_lea.vmem %s1804_s30, 2048  ;;  %p1642_p0 = scmp.lt.s32.totalorder %s1804_s30, %s1804_s30 }
  0x30   : > { %p1635_p11 = scmp.ne.s32.totalorder %s1804_s30, %s1634_s27  ;;  %p1643_p2 = scmp.lt.s32.totalorder %s1634_s27, %s1634_s27 }
  0x32   : > { %p1637_p12 = pnand %p1635_p11, %p1595_p9  ;;  %p1644_p3 = por %p1643_p2, %p1642_p0 }
  0x34   : > { %p1638_p13 = pneg %p1637_p12 }
  0x36   : > { %p1645_p6 = pnand %p1644_p3, %p1638_p13 }
  0x38   : > { %1648 = shalt.err (!%p1645_p6)
}
  0x39   : > { %s1723_s10 = smov 64   ;;  %s1724_s11 = smov 4  }
  0x3a   : > { %1479 = dma.hbm_to_vmem [thread:$0]  (!%p1800_p7), %s2179_s3, 2048, %s1804_s30, [#allocation5], %s1723_s10, %s1723_s10, %s1724_s11  }
  0x3b   : > { %s1854_s14 = sadd.s32 1, %s1717_s21   ;;  %s26_s16 = sadd.s32 1, %s1713_s20 }
  0x3c   : > { %s23_s15 = ssub.s32 %s1717_s21, %s1854_s14  ;;  %p33_p8 = scmp.ne.s32.totalorder %s1713_s20, %s1709_s19 }
  0x3d   : > { %p24_p9 = scmp.eq.s32.totalorder %s23_s15, 0  ;;  %p34_p1 = scmp.eq.s32.totalorder %s1717_s21, 0 }
  0x3e   : > { %p1486_p5 = scmp.lt.s32.totalorder %s1717_s21, 2  ;;  %s205_s18 = sand.u32 1, %s1713_s20  }
  0x3f   : > { %s1863_s17 = scalar_select %p24_p9, %s1713_s20, %s26_s16  }
  0x40   : > { %p35_p4 = por %p34_p1, %p33_p8  ;;  %s1350_s26 = sshll.u32 %s1717_s21, 13 }
  0x41   : > { %s1288_s29 = sshll.u32 %s205_s18, 9  ;;  %s1871_s7 = scalar_lea.hbm %s2176_s0, %s1350_s26 }
  0x42   : > { %s209_s30 = scalar_lea.vmem [#allocation2], %s1288_s29  ;;  %p1873_p7 = pnand %p1486_p5, %p35_p4 }
  0x43   : > { %s217_s8 = sshll.u32 %s209_s30, 4  ;;  %s1879_s27 = scalar_lea.sflag [#allocation3], %s205_s18  ;;  %s1877_s8 = int_to_ptr.vmem [resolvable:$true] %s217_s8 }
  0x44   : > { %s1649_s10 = scalar_lea.hbm %s1871_s7, 8192  ;;  %p1651_p11 = pneg %p1873_p7 }
  0x45   : > { %p1650_p10 = scmp.ne.s32.totalorder %s1871_s7, %s1649_s10  ;;  %s1654_s13 = scalar_lea.hbm %s2176_s0, 16384 }
  0x46   : > { %p1655_p0 = scmp.lt.u32.totalorder %s1871_s7, %s2176_s0  ;;  %p1656_p2 = scmp.lt.u32.totalorder %s1654_s13, %s1649_s10 }
  0x47   : > { %p1652_p12 = pnand %p1651_p11, %p1650_p10  ;;  %p1658_p6 = scmp.lt.u32.totalorder %s1649_s10, %s1871_s7 }
  0x48   : > { %p1657_p3 = por %p1656_p2, %p1655_p0 }
  0x49   : > { %p1653_p13 = pneg %p1652_p12 }
  0x4a   : > { %p1659_p9 = por %p1658_p6, %p1657_p3 }
  0x4c   : > { %p1660_p8 = pnand %p1659_p9, %p1653_p13 }
  0x4e   : > { %1663 = shalt.err (!%p1660_p8)
}
  0x4f   : > { %s1664_s18 = scalar_lea.vmem %s1877_s8, 8192  ;;  %s1725_s26 = smov [#allocation2]  }
  0x50   : > { %p1665_p1 = scmp.ne.s32.totalorder %s1877_s8, %s1664_s18  ;;  %s1669_s29 = sshll.u32 %s1725_s26, 4  ;;  %s1670_s29 = int_to_ptr.vmem [resolvable:$false] %s1669_s29 }
  0x51   : > { %s1671_s28 = scalar_lea.vmem %s1670_s29, 16384  ;;  %p1672_p10 = scmp.lt.s32.totalorder %s1877_s8, %s1670_s29 }
  0x52   : > { %p1667_p4 = pnand %p1665_p1, %p1651_p11  ;;  %p1673_p12 = scmp.lt.s32.totalorder %s1671_s28, %s1664_s18 }
  0x54   : > { %p1668_p5 = pneg %p1667_p4  ;;  %p1674_p0 = por %p1673_p12, %p1672_p10 }
  0x56   : > { %p1675_p2 = pnand %p1674_p0, %p1668_p5 }
  0x58   : > { %1678 = shalt.err (!%p1675_p2)
}
  0x59   : > { %s1726_s6 = smov 256   ;;  %s1727_s30 = smov 16  }
  0x5a   : > { %1483 = dma.hbm_to_vmem [thread:$0]  (!%p1873_p7), %s1871_s7, 8192, %s1877_s8, %s1879_s27, %s1726_s6, %s1726_s6, %s1727_s30  }
  0x5b   : > { %p2191_p11 = scmp.ne.s32.totalorder %s2188_s25, 0 }
  0x5c   : > { %s231_s10 = sand.u32 (!%p2191_p11), 1, %s1709_s19   ;;  %p2192_p13 = scmp.ne.s32.totalorder (!%p2191_p11), %s2187_s24, 0 }
  0x5d   : > { %229 = sbr.rel (%p2191_p11) target bundleno = 731 (0x2db), region = 40  ;;  %s1293_s11 = sshll.u32 (!%p2191_p11), %s231_s10, 9 }
  0x5e   : > { %s232_s12 = scalar_lea.sflag (!%p2191_p11), [#allocation3], %s231_s10  ;;  %s1910_s13 = scalar_lea.vmem (!%p2191_p11), [#allocation2], %s1293_s11 }
  0x64   : > { %1696 = dma.done.wait (%p2192_p13), %s232_s12, 8192  }
  0x65   : > { %1698 = vsyncadd (%p2192_p13), %s232_s12, 4294959104  ;;  %p2193_p3 = scmp.ne.s32.totalorder %s2186_s23, 0 }
  0x67   : > { %1700 = dma.done.wait (%p2193_p3), [#allocation5], 6144  }
  0x68   : > { %1702 = vsyncadd (%p2193_p3), [#allocation5], 4294961152  ;;  %v1529_v0 = vld [vmem:[#allocation4 + $0x4] ss:$8 sps:$4 sm:$0xff]   ;;  %v1531_v1 = vld [vmem:[#allocation4] ss:$8 sps:$4 sm:$0xff]  }
  0x69   : > { %578 = vmatprep.subr.bf16.mxu0 %v1529_v0  ;;  %v1532_v2 = vld [vmem:[#allocation4 + $0x14] ss:$8 sps:$4 sm:$0xff]   ;;  %v1534_v3 = vld [vmem:[#allocation4 + $0x10] ss:$8 sps:$4 sm:$0xff]   ;;  %v1535_v4 = vld [vmem:[#allocation4 + $0x24] ss:$8 sps:$4 sm:$0xff]  }
  0x6a   : > { %579 = vmatpush1.bf16.msra.mxu0 %v1531_v1  ;;  %v1537_v5 = vld [vmem:[#allocation4 + $0x20] ss:$8 sps:$4 sm:$0xff]   ;;  %v1538_v6 = vld [vmem:[#allocation4 + $0x34] ss:$8 sps:$4 sm:$0xff]   ;;  %v1540_v7 = vld [vmem:[#allocation4 + $0x30] ss:$8 sps:$4 sm:$0xff]  }
  0x6b   : > { %580 = vmatprep.subr.bf16.mxu0 %v1532_v2  ;;  %v1541_v8 = vld [vmem:[#allocation4 + $0x44] ss:$8 sps:$4 sm:$0xff]   ;;  %v1543_v9 = vld [vmem:[#allocation4 + $0x40] ss:$8 sps:$4 sm:$0xff]   ;;  %v1544_v10 = vld [vmem:[#allocation4 + $0x54] ss:$8 sps:$4 sm:$0xff]  }
  0x6c   : > { %v1546_v11 = vld [vmem:[#allocation4 + $0x50] ss:$8 sps:$4 sm:$0xff]   ;;  %v1547_v12 = vld [vmem:[#allocation4 + $0x64] ss:$8 sps:$4 sm:$0xff]   ;;  %v1549_v16 = vld [vmem:[#allocation4 + $0x60] ss:$8 sps:$4 sm:$0xff]  }
  0x6d   : > { %v279_v13 = vld [vmem:[%s1910_s13 + $0x8] sm:$0xff]  ;;  %v281_v14 = vld [vmem:[%s1910_s13 + $0x18] sm:$0xff]  ;;  %v1577_v34 = vld [vmem:[#allocation6 + $0x40] sm:$0xff]   ;;  %s1296_s25 = sshll.u32 %s1282_s22, 5  ;;  %vm1163_vm0 = vcmask 7168  }
  0x6e   : > { %581 = vmatpush1.bf16.msra.mxu0 %v1534_v3  ;;  %v343_v15 = vpack.c.bf16 %v281_v14, %v279_v13  ;;  %v1550_v17 = vld [vmem:[#allocation4 + $0x74] ss:$8 sps:$4 sm:$0xff]   ;;  %v1552_v18 = vld [vmem:[#allocation4 + $0x70] ss:$8 sps:$4 sm:$0xff]   ;;  %v1553_v19 = vld [vmem:[#allocation4 + $0x84] ss:$8 sps:$4 sm:$0xff]   ;;  %1351 = vmatprep.subr.bf16.mxu1 %v1577_v34 }
  0x6f   : > { %582 = vmatprep.subr.bf16.mxu0 %v1535_v4  ;;  %v1555_v20 = vld [vmem:[#allocation4 + $0x80] ss:$8 sps:$4 sm:$0xff]   ;;  %v1556_v21 = vld [vmem:[#allocation4 + $0x94] ss:$8 sps:$4 sm:$0xff]   ;;  %v1558_v22 = vld [vmem:[#allocation4 + $0x90] ss:$8 sps:$4 sm:$0xff]  }
  0x70   : > { %610 = vmatprep.mubr.bf16.mxu0 %v343_v15  ;;  %v1559_v23 = vld [vmem:[#allocation4 + $0xa4] ss:$8 sps:$4 sm:$0xff]   ;;  %v1561_v24 = vld [vmem:[#allocation4 + $0xa0] ss:$8 sps:$4 sm:$0xff]   ;;  %v1562_v25 = vld [vmem:[#allocation4 + $0xb4] ss:$8 sps:$4 sm:$0xff]  }
  0x71   : > { %v1564_v26 = vld [vmem:[#allocation4 + $0xb0] ss:$8 sps:$4 sm:$0xff]   ;;  %v1565_v27 = vld [vmem:[#allocation4 + $0xc4] ss:$8 sps:$4 sm:$0xff]   ;;  %v1567_v28 = vld [vmem:[#allocation4 + $0xc0] ss:$8 sps:$4 sm:$0xff]  }
  0x72   : > { %583 = vmatpush1.bf16.msra.mxu0 %v1537_v5  ;;  %v1568_v29 = vld [vmem:[#allocation4 + $0xd4] ss:$8 sps:$4 sm:$0xff]   ;;  %v1570_v30 = vld [vmem:[#allocation4 + $0xd0] ss:$8 sps:$4 sm:$0xff]   ;;  %v1571_v31 = vld [vmem:[#allocation4 + $0xe4] ss:$8 sps:$4 sm:$0xff]  }
  0x73   : > { %584 = vmatprep.subr.bf16.mxu0 %v1538_v6  ;;  %v1573_v32 = vld [vmem:[#allocation4 + $0xe0] ss:$8 sps:$4 sm:$0xff]   ;;  %v1574_v33 = vld [vmem:[#allocation4 + $0xf4] ss:$8 sps:$4 sm:$0xff]   ;;  %v1576_v37 = vld [vmem:[#allocation4 + $0xf0] ss:$8 sps:$4 sm:$0xff]  }
  0x74   : > { %v1578_v35 = vld [vmem:[#allocation6] sm:$0xff]   ;;  %v1579_v36 = vld [vmem:[#allocation6 + $0x48] sm:$0xff]   ;;  %v280_v39 = vld [vmem:[%s1910_s13 + $0x10] sm:$0xff]  ;;  %p272_p7 = scmp.lt.s32.totalorder %s1296_s25, 63 }
  0x75   : > { %v278_v38 = vld [vmem:[%s1910_s13] sm:$0xff]  ;;  %v283_v40 = vld [vmem:[%s1910_s13 + $0x28] sm:$0xff]  ;;  %v285_v41 = vld [vmem:[%s1910_s13 + $0x38] sm:$0xff]  ;;  %1352 = vmatpush3.bf16.msra.mxu1 %v1578_v35 }
  0x76   : > { %585 = vmatpush1.bf16.msra.mxu0 %v1540_v7  ;;  %v1580_v42 = vld [vmem:[#allocation6 + $0x8] sm:$0xff]   ;;  %v342_v43 = vpack.c.bf16 %v280_v39, %v278_v38  ;;  %1353 = vmatprep.subr.bf16.mxu1 %v1579_v36  ;;  %v1581_v44 = vld [vmem:[#allocation6 + $0x50] sm:$0xff]   ;;  %v345_v45 = vpack.c.bf16 %v285_v41, %v283_v40  ;;  %v1583_v47 = vld [vmem:[#allocation6 + $0x58] sm:$0xff]   ;;  %s2199_s25 = smov (!%p272_p7, %s1296_s25), 63 }
  0x77   : > { %586 = vmatprep.subr.bf16.mxu0 %v1541_v8  ;;  %v1582_v46 = vld [vmem:[#allocation6 + $0x10] sm:$0xff]   ;;  %v282_v48 = vld [vmem:[%s1910_s13 + $0x20] sm:$0xff]  ;;  %v287_v50 = vld [vmem:[%s1910_s13 + $0x48] sm:$0xff]  ;;  %s1297_s7 = sshll.u32 %s2199_s25, 3 }
  0x78   : > { %v284_v49 = vld [vmem:[%s1910_s13 + $0x30] sm:$0xff]  ;;  %v289_v51 = vld [vmem:[%s1910_s13 + $0x58] sm:$0xff]  ;;  %v1585_v54 = vld [vmem:[#allocation6 + $0x60] sm:$0xff]   ;;  %s2065_s16 = scalar_lea.vmem %s2181_s5, %s1297_s7 }
  0x79   : > { %1354 = vmatpush3.bf16.msra.mxu1 %v1580_v42  ;;  %v1584_v52 = vld [vmem:[#allocation6 + $0x18] sm:$0xff]   ;;  %v344_v53 = vpack.c.bf16 %v284_v49, %v282_v48  ;;  %v347_v55 = vpack.c.bf16 %v289_v51, %v287_v50  ;;  %v1586_v56 = vld [vmem:[#allocation6 + $0x20] sm:$0xff]   ;;  %v1587_v57 = vld [vmem:[#allocation6 + $0x68] sm:$0xff]  }
  0x7a   : > { %587 = vmatpush1.bf16.msra.mxu0 %v1543_v9  ;;  %1355 = vmatprep.subr.bf16.mxu1 %v1581_v44  ;;  %v286_v58 = vld [vmem:[%s1910_s13 + $0x40] sm:$0xff]  ;;  %v288_v59 = vld [vmem:[%s1910_s13 + $0x50] sm:$0xff]  ;;  %v291_v60 = vld [vmem:[%s1910_s13 + $0x68] sm:$0xff] }
  0x7b   : > { %588 = vmatprep.subr.bf16.mxu0 %v1544_v10  ;;  %v293_v61 = vld [vmem:[%s1910_s13 + $0x78] sm:$0xff]  ;;  %v346_v62 = vpack.c.bf16 %v288_v59, %v286_v58  ;;  %v290_v0 = vld [vmem:[%s1910_s13 + $0x60] sm:$0xff]  ;;  %v292_v1 = vld [vmem:[%s1910_s13 + $0x70] sm:$0xff] }
  0x7c   : > { %v349_v63 = vpack.c.bf16 %v293_v61, %v291_v60  ;;  %v295_v2 = vld [vmem:[%s1910_s13 + $0x88] sm:$0xff]  ;;  %v297_v3 = vld [vmem:[%s1910_s13 + $0x98] sm:$0xff]  ;;  %v348_v4 = vpack.c.bf16 %v292_v1, %v290_v0  ;;  %v294_v6 = vld [vmem:[%s1910_s13 + $0x80] sm:$0xff] }
  0x7d   : > { %1356 = vmatpush3.bf16.msra.mxu1 %v1582_v46  ;;  %v351_v5 = vpack.c.bf16 %v297_v3, %v295_v2  ;;  %v296_v7 = vld [vmem:[%s1910_s13 + $0x90] sm:$0xff]  ;;  %v299_v8 = vld [vmem:[%s1910_s13 + $0xa8] sm:$0xff]  ;;  %v301_v9 = vld [vmem:[%s1910_s13 + $0xb8] sm:$0xff] }
  0x7e   : > { %589 = vmatpush1.bf16.msra.mxu0 %v1546_v11  ;;  %1357 = vmatprep.subr.bf16.mxu1 %v1583_v47  ;;  %v350_v10 = vpack.c.bf16 %v296_v7, %v294_v6  ;;  %v353_v11 = vpack.c.bf16 %v301_v9, %v299_v8  ;;  %v300_v13 = vld [vmem:[%s1910_s13 + $0xb0] sm:$0xff]  ;;  %v303_v14 = vld [vmem:[%s1910_s13 + $0xc8] sm:$0xff]  ;;  %v305_v15 = vld [vmem:[%s1910_s13 + $0xd8] sm:$0xff] }
  0x7f   : > { %590 = vmatprep.subr.bf16.mxu0 %v1547_v12  ;;  %v298_v12 = vld [vmem:[%s1910_s13 + $0xa0] sm:$0xff]  ;;  %v319_v38 = vld [vmem:[%s1910_s13 + $0x148] sm:$0xff]  ;;  %v321_v39 = vld [vmem:[%s1910_s13 + $0x158] sm:$0xff] }
  0x80   : > { %v314_v36 = vld [vmem:[%s1910_s13 + $0x120] sm:$0xff]  ;;  %v363_v41 = vpack.c.bf16 %v321_v39, %v319_v38  ;;  %v323_v44 = vld [vmem:[%s1910_s13 + $0x168] sm:$0xff]  ;;  %v324_v49 = vld [vmem:[%s1910_s13 + $0x170] sm:$0xff] }
  0x81   : > { %1358 = vmatpush3.bf16.msra.mxu1 %v1584_v52  ;;  %v318_v42 = vld [vmem:[%s1910_s13 + $0x140] sm:$0xff]  ;;  %v1588_v50 = vld [vmem:[#allocation6 + $0x28] sm:$0xff]   ;;  %v329_v52 = vld [vmem:[%s1910_s13 + $0x198] sm:$0xff] }
  0x82   : > { %591 = vmatpush1.bf16.msra.mxu0 %v1549_v16  ;;  %1359 = vmatprep.subr.bf16.mxu1 %v1585_v54  ;;  %v352_v16 = vpack.c.bf16 %v300_v13, %v298_v12  ;;  %v322_v48 = vld [vmem:[%s1910_s13 + $0x160] sm:$0xff]  ;;  %v327_v51 = vld [vmem:[%s1910_s13 + $0x188] sm:$0xff]  ;;  %v1589_v54 = vld [vmem:[#allocation6 + $0x70] sm:$0xff]  }
  0x83   : > { %592 = vmatprep.subr.bf16.mxu0 %v1550_v17  ;;  %v355_v17 = vpack.c.bf16 %v305_v15, %v303_v14  ;;  %v326_v58 = vld [vmem:[%s1910_s13 + $0x180] sm:$0xff]  ;;  %v328_v59 = vld [vmem:[%s1910_s13 + $0x190] sm:$0xff]  ;;  %v1592_v60 = vld [vmem:[#allocation6 + $0x38] sm:$0xff]  }
  0x84   : > { %v331_v61 = vld [vmem:[%s1910_s13 + $0x1a8] sm:$0xff]  ;;  %v330_v1 = vld [vmem:[%s1910_s13 + $0x1a0] sm:$0xff]  ;;  %v332_v2 = vld [vmem:[%s1910_s13 + $0x1b0] sm:$0xff] }
  0x85   : > { %1360 = vmatpush3.bf16.msra.mxu1 %v1586_v56  ;;  %v1590_v56 = vld [vmem:[#allocation6 + $0x30] sm:$0xff]   ;;  %v335_v3 = vld [vmem:[%s1910_s13 + $0x1c8] sm:$0xff]  ;;  %v334_v7 = vld [vmem:[%s1910_s13 + $0x1c0] sm:$0xff] }
  0x86   : > { %593 = vmatpush1.bf16.msra.mxu0 %v1552_v18  ;;  %1361 = vmatprep.subr.bf16.mxu1 %v1587_v57  ;;  %v302_v18 = vld [vmem:[%s1910_s13 + $0xc0] sm:$0xff]  ;;  %v1591_v57 = vld [vmem:[#allocation6 + $0x78] sm:$0xff]   ;;  %v336_v8 = vld [vmem:[%s1910_s13 + $0x1d0] sm:$0xff] }
  0x87   : > { %594 = vmatprep.subr.bf16.mxu0 %v1553_v19  ;;  %v304_v19 = vld [vmem:[%s1910_s13 + $0xd0] sm:$0xff]  ;;  %v339_v9 = vld [vmem:[%s1910_s13 + $0x1e8] sm:$0xff]  ;;  %v338_v13 = vld [vmem:[%s1910_s13 + $0x1e0] sm:$0xff] }
  0x88   : > { %v340_v14 = vld [vmem:[%s1910_s13 + $0x1f0] sm:$0xff] }
  0x89   : > { %1362 = vmatpush3.bf16.msra.mxu1 %v1588_v50  ;;  %v372_v15 = vpack.c.bf16 %v340_v14, %v338_v13 }
  0x8a   : > { %595 = vmatpush1.bf16.msra.mxu0 %v1555_v20  ;;  %v307_v20 = vld [vmem:[%s1910_s13 + $0xe8] sm:$0xff]  ;;  %1363 = vmatprep.subr.bf16.mxu1 %v1589_v54 }
  0x8b   : > { %596 = vmatprep.subr.bf16.mxu0 %v1556_v21  ;;  %v309_v21 = vld [vmem:[%s1910_s13 + $0xf8] sm:$0xff] }
  0x8d   : > { %1364 = vmatpush3.bf16.msra.mxu1 %v1590_v56 }
  0x8e   : > { %597 = vmatpush1.bf16.msra.mxu0 %v1558_v22  ;;  %v354_v22 = vpack.c.bf16 %v304_v19, %v302_v18  ;;  %1365 = vmatprep.subr.bf16.mxu1 %v1591_v57  ;;  %v406_v19 = vld [vmem:[%s2178_s2] sm:$0x3] }
  0x8f   : > { %598 = vmatprep.subr.bf16.mxu0 %v1559_v23  ;;  %v357_v23 = vpack.c.bf16 %v309_v21, %v307_v20 }
  0x91   : > { %1366 = vmatpush3.bf16.msra.mxu1 %v1592_v60 }
  0x92   : > { %599 = vmatpush1.bf16.msra.mxu0 %v1561_v24  ;;  %v306_v24 = vld [vmem:[%s1910_s13 + $0xe0] sm:$0xff] }
  0x93   : > { %600 = vmatprep.subr.bf16.mxu0 %v1562_v25  ;;  %v308_v25 = vld [vmem:[%s1910_s13 + $0xf0] sm:$0xff] }
  0x96   : > { %601 = vmatpush1.bf16.msra.mxu0 %v1564_v26  ;;  %v311_v26 = vld [vmem:[%s1910_s13 + $0x108] sm:$0xff] }
  0x97   : > { %602 = vmatprep.subr.bf16.mxu0 %v1565_v27  ;;  %v313_v27 = vld [vmem:[%s1910_s13 + $0x118] sm:$0xff] }
  0x9a   : > { %603 = vmatpush1.bf16.msra.mxu0 %v1567_v28  ;;  %v356_v28 = vpack.c.bf16 %v308_v25, %v306_v24 }
  0x9b   : > { %604 = vmatprep.subr.bf16.mxu0 %v1568_v29  ;;  %v359_v29 = vpack.c.bf16 %v313_v27, %v311_v26 }
  0x9e   : > { %605 = vmatpush1.bf16.msra.mxu0 %v1570_v30  ;;  %v310_v30 = vld [vmem:[%s1910_s13 + $0x100] sm:$0xff] }
  0x9f   : > { %606 = vmatprep.subr.bf16.mxu0 %v1571_v31  ;;  %v312_v31 = vld [vmem:[%s1910_s13 + $0x110] sm:$0xff] }
  0xa0   : > { %v358_v34 = vpack.c.bf16 %v312_v31, %v310_v30 }
  0xa2   : > { %607 = vmatpush1.bf16.msra.mxu0 %v1573_v32  ;;  %v315_v32 = vld [vmem:[%s1910_s13 + $0x128] sm:$0xff] }
  0xa3   : > { %608 = vmatprep.subr.bf16.mxu0 %v1574_v33  ;;  %v317_v33 = vld [vmem:[%s1910_s13 + $0x138] sm:$0xff] }
  0xa4   : > { %v361_v35 = vpack.c.bf16 %v317_v33, %v315_v32 }
  0xa6   : > { %609 = vmatpush1.bf16.msra.mxu0 %v1576_v37  ;;  %v316_v37 = vld [vmem:[%s1910_s13 + $0x130] sm:$0xff] }
  0xa7   : > { %v360_v40 = vpack.c.bf16 %v316_v37, %v314_v36 }
  0xa9   : > { %611 = vmatmul.mubr.bf16.vlgmr.msra.gmra.mrb[0].mxu0 %v342_v43  ;;  %v320_v43 = vld [vmem:[%s1910_s13 + $0x150] sm:$0xff] }
  0xaa   : > { %620 = vmatprep.mubr.bf16.mxu0 %v345_v45  ;;  %v325_v45 = vld [vmem:[%s1910_s13 + $0x178] sm:$0xff]  ;;  %v362_v46 = vpack.c.bf16 %v320_v43, %v318_v42 }
  0xab   : > { %v365_v47 = vpack.c.bf16 %v325_v45, %v323_v44 }
  0xb1   : > { %621 = vmatmul.mubr.bf16.gmra.mrb[4].mxu0 %v344_v53  ;;  %v364_v53 = vpack.c.bf16 %v324_v49, %v322_v48 }
  0xb2   : > { %630 = vmatprep.mubr.bf16.mxu0 %v347_v55  ;;  %v367_v55 = vpack.c.bf16 %v329_v52, %v327_v51 }
  0xb9   : > { %631 = vmatmul.mubr.bf16.gmra.mrb[8].mxu0 %v346_v62  ;;  %v333_v62 = vld [vmem:[%s1910_s13 + $0x1b8] sm:$0xff] }
  0xba   : > { %640 = vmatprep.mubr.bf16.mxu0 %v349_v63  ;;  %v366_v63 = vpack.c.bf16 %v328_v59, %v326_v58  ;;  %v369_v0 = vpack.c.bf16 %v333_v62, %v331_v61 }
  0xc1   : > { %641 = vmatmul.mubr.bf16.gmra.mrb[12].mxu0 %v348_v4  ;;  %v337_v4 = vld [vmem:[%s1910_s13 + $0x1d8] sm:$0xff] }
  0xc2   : > { %650 = vmatprep.mubr.bf16.mxu0 %v351_v5  ;;  %v368_v5 = vpack.c.bf16 %v332_v2, %v330_v1  ;;  %v371_v6 = vpack.c.bf16 %v337_v4, %v335_v3 }
  0xc9   : > { %651 = vmatmul.mubr.bf16.gmra.mrb[16].mxu0 %v350_v10  ;;  %v341_v10 = vld [vmem:[%s1910_s13 + $0x1f8] sm:$0xff] }
  0xca   : > { %660 = vmatprep.mubr.bf16.mxu0 %v353_v11  ;;  %v370_v11 = vpack.c.bf16 %v336_v8, %v334_v7  ;;  %v373_v12 = vpack.c.bf16 %v341_v10, %v339_v9 }
  0xd1   : > { %661 = vmatmul.mubr.bf16.gmra.mrb[20].mxu0 %v352_v16  ;;  %v408_v16 = vlaneseq }
  0xd2   : > { %670 = vmatprep.mubr.bf16.mxu0 %v355_v17 }
  0xd3   : > { %v409_v17 = vshrl.u32 %v408_v16, 7 }
  0xd5   : > { %v410_v18 = vsub.s32 0, %v409_v17  ;;  %v414_v20 = vsub.s32 1, %v409_v17 }
  0xd7   : > { %v1987_v21 = vrot.slane %v406_v19, %v410_v18 }
  0xd9   : > { %671 = vmatmul.mubr.bf16.gmra.mrb[24].mxu0 %v354_v22  ;;  %v1989_v22 = vrot.slane %v406_v19, %v414_v20 }
  0xda   : > { %680 = vmatprep.mubr.bf16.mxu0 %v357_v23 }
  0xe1   : > { %681 = vmatmul.mubr.bf16.gmra.mrb[28].mxu0 %v356_v28 }
  0xe2   : > { %690 = vmatprep.mubr.bf16.mxu0 %v359_v29 }
  0xe9   : > { %691 = vmatmul.mubr.bf16.gmra.mrb[32].mxu0 %v358_v34 }
  0xea   : > { %700 = vmatprep.mubr.bf16.mxu0 %v361_v35 }
  0xf1   : > { %701 = vmatmul.mubr.bf16.gmra.mrb[36].mxu0 %v360_v40 }
  0xf2   : > { %710 = vmatprep.mubr.bf16.mxu0 %v363_v41 }
  0xf9   : > { %711 = vmatmul.mubr.bf16.gmra.mrb[40].mxu0 %v362_v46 }
  0xfa   : > { %720 = vmatprep.mubr.bf16.mxu0 %v365_v47 }
 0x101   : > { %721 = vmatmul.mubr.bf16.gmra.mrb[44].mxu0 %v364_v53 }
 0x102   : > { %730 = vmatprep.mubr.bf16.mxu0 %v367_v55 }
 0x109   : > { %731 = vmatmul.mubr.bf16.gmra.mrb[48].mxu0 %v366_v63 }
 0x10a   : > { %740 = vmatprep.mubr.bf16.mxu0 %v369_v0 }
 0x111   : > { %741 = vmatmul.mubr.bf16.gmra.mrb[52].mxu0 %v368_v5 }
 0x112   : > { %750 = vmatprep.mubr.bf16.mxu0 %v371_v6 }
 0x119   : > { %751 = vmatmul.mubr.bf16.gmra.mrb[56].mxu0 %v370_v11 }
 0x11a   : > { %760 = vmatprep.mubr.bf16.mxu0 %v373_v12 }
 0x121   : > { %761 = vmatmul.mubr.bf16.gmra.mrb[60].mxu0 %v372_v15 }
 0x17c   : > { %v612_v23 = vpop.f32.mrb[0].mxu0 }
 0x17d   : > { %v613_v24 = vadd.f32 %v612_v23, %v1987_v21  ;;  %v614_v25 = vpop.f32.mrb[1].mxu0 }
 0x17e   : > { %v615_v26 = vadd.f32 %v614_v25, %v1989_v22  ;;  %v616_v27 = vpop.f32.mrb[2].mxu0 }
 0x17f   : > { %v617_v28 = vadd.f32 %v616_v27, %v1987_v21  ;;  %v618_v29 = vpop.f32.mrb[3].mxu0  ;;  %v771_v31 = vmax.f32 %v613_v24, 0.0 }
 0x180   : > { %v619_v30 = vadd.f32 %v618_v29, %v1989_v22  ;;  %v772_v33 = vmax.f32 %v615_v26, 0.0 }
 0x181   : > { %v773_v32 = vmax.f32 %v617_v28, 0.0 }
 0x182   : > { %v774_v34 = vmax.f32 %v619_v30, 0.0 }
 0x183   : > { %v835_v35 = vpack.c.bf16 %v773_v32, %v771_v31 }
 0x184   : > { %v622_v36 = vpop.f32.mrb[4].mxu0  ;;  %v836_v37 = vpack.c.bf16 %v774_v34, %v772_v33 }
 0x185   : > { %v623_v38 = vadd.f32 %v622_v36, %v1987_v21  ;;  %v624_v39 = vpop.f32.mrb[5].mxu0 }
 0x186   : > { %v625_v40 = vadd.f32 %v624_v39, %v1989_v22  ;;  %v626_v41 = vpop.f32.mrb[6].mxu0  ;;  %1034 = vmatprep.mubr.bf16.mxu1 %v836_v37 }
 0x187   : > { %v627_v42 = vadd.f32 %v626_v41, %v1987_v21  ;;  %v628_v43 = vpop.f32.mrb[7].mxu0  ;;  %1035 = vmatmul.mubr.bf16.vlgmr.msra.gmra.mrb[0].mxu1 %v835_v35  ;;  %v775_v45 = vmax.f32 %v623_v38, 0.0 }
 0x188   : > { %v629_v44 = vadd.f32 %v628_v43, %v1989_v22  ;;  %v776_v47 = vmax.f32 %v625_v40, 0.0 }
 0x189   : > { %v777_v46 = vmax.f32 %v627_v42, 0.0 }
 0x18a   : > { %v778_v48 = vmax.f32 %v629_v44, 0.0 }
 0x18b   : > { %v837_v49 = vpack.c.bf16 %v777_v46, %v775_v45 }
 0x18c   : > { %v838_v50 = vpack.c.bf16 %v778_v48, %v776_v47  ;;  %v632_v51 = vpop.f32.mrb[8].mxu0 }
 0x18d   : > { %v633_v52 = vadd.f32 %v632_v51, %v1987_v21  ;;  %v634_v53 = vpop.f32.mrb[9].mxu0 }
 0x18e   : > { %v635_v54 = vadd.f32 %v634_v53, %v1989_v22  ;;  %v636_v55 = vpop.f32.mrb[10].mxu0  ;;  %1042 = vmatprep.mubr.bf16.mxu1 %v838_v50 }
 0x18f   : > { %v637_v56 = vadd.f32 %v636_v55, %v1987_v21  ;;  %v638_v57 = vpop.f32.mrb[11].mxu0  ;;  %1043 = vmatmul.mubr.bf16.gmra.mrb[4].mxu1 %v837_v49  ;;  %v779_v59 = vmax.f32 %v633_v52, 0.0 }
 0x190   : > { %v639_v58 = vadd.f32 %v638_v57, %v1989_v22  ;;  %v780_v61 = vmax.f32 %v635_v54, 0.0 }
 0x191   : > { %v781_v60 = vmax.f32 %v637_v56, 0.0 }
 0x192   : > { %v782_v62 = vmax.f32 %v639_v58, 0.0 }
 0x193   : > { %v839_v63 = vpack.c.bf16 %v781_v60, %v779_v59 }
 0x194   : > { %v840_v0 = vpack.c.bf16 %v782_v62, %v780_v61  ;;  %v642_v1 = vpop.f32.mrb[12].mxu0 }
 0x195   : > { %v643_v2 = vadd.f32 %v642_v1, %v1987_v21  ;;  %v644_v3 = vpop.f32.mrb[13].mxu0 }
 0x196   : > { %v645_v4 = vadd.f32 %v644_v3, %v1989_v22  ;;  %v646_v5 = vpop.f32.mrb[14].mxu0  ;;  %1050 = vmatprep.mubr.bf16.mxu1 %v840_v0 }
 0x197   : > { %v647_v6 = vadd.f32 %v646_v5, %v1987_v21  ;;  %v648_v7 = vpop.f32.mrb[15].mxu0  ;;  %1051 = vmatmul.mubr.bf16.gmra.mrb[8].mxu1 %v839_v63  ;;  %v783_v9 = vmax.f32 %v643_v2, 0.0 }
 0x198   : > { %v649_v8 = vadd.f32 %v648_v7, %v1989_v22  ;;  %v784_v11 = vmax.f32 %v645_v4, 0.0 }
 0x199   : > { %v785_v10 = vmax.f32 %v647_v6, 0.0 }
 0x19a   : > { %v786_v12 = vmax.f32 %v649_v8, 0.0 }
 0x19b   : > { %v841_v13 = vpack.c.bf16 %v785_v10, %v783_v9 }
 0x19c   : > { %v842_v14 = vpack.c.bf16 %v786_v12, %v784_v11  ;;  %v652_v15 = vpop.f32.mrb[16].mxu0 }
 0x19d   : > { %v653_v16 = vadd.f32 %v652_v15, %v1987_v21  ;;  %v654_v17 = vpop.f32.mrb[17].mxu0 }
 0x19e   : > { %v655_v18 = vadd.f32 %v654_v17, %v1989_v22  ;;  %v656_v19 = vpop.f32.mrb[18].mxu0  ;;  %1058 = vmatprep.mubr.bf16.mxu1 %v842_v14 }
 0x19f   : > { %v657_v20 = vadd.f32 %v656_v19, %v1987_v21  ;;  %v658_v23 = vpop.f32.mrb[19].mxu0  ;;  %1059 = vmatmul.mubr.bf16.gmra.mrb[12].mxu1 %v841_v13  ;;  %v787_v25 = vmax.f32 %v653_v16, 0.0 }
 0x1a0   : > { %v659_v24 = vadd.f32 %v658_v23, %v1989_v22  ;;  %v788_v27 = vmax.f32 %v655_v18, 0.0 }
 0x1a1   : > { %v789_v26 = vmax.f32 %v657_v20, 0.0 }
 0x1a2   : > { %v790_v28 = vmax.f32 %v659_v24, 0.0 }
 0x1a3   : > { %v843_v29 = vpack.c.bf16 %v789_v26, %v787_v25 }
 0x1a4   : > { %v844_v30 = vpack.c.bf16 %v790_v28, %v788_v27  ;;  %v662_v31 = vpop.f32.mrb[20].mxu0 }
 0x1a5   : > { %v663_v32 = vadd.f32 %v662_v31, %v1987_v21  ;;  %v664_v33 = vpop.f32.mrb[21].mxu0 }
 0x1a6   : > { %v665_v34 = vadd.f32 %v664_v33, %v1989_v22  ;;  %v666_v35 = vpop.f32.mrb[22].mxu0  ;;  %1066 = vmatprep.mubr.bf16.mxu1 %v844_v30 }
 0x1a7   : > { %v667_v36 = vadd.f32 %v666_v35, %v1987_v21  ;;  %v668_v37 = vpop.f32.mrb[23].mxu0  ;;  %1067 = vmatmul.mubr.bf16.gmra.mrb[16].mxu1 %v843_v29  ;;  %v791_v39 = vmax.f32 %v663_v32, 0.0 }
 0x1a8   : > { %v669_v38 = vadd.f32 %v668_v37, %v1989_v22  ;;  %v792_v41 = vmax.f32 %v665_v34, 0.0 }
 0x1a9   : > { %v793_v40 = vmax.f32 %v667_v36, 0.0 }
 0x1aa   : > { %v794_v42 = vmax.f32 %v669_v38, 0.0 }
 0x1ab   : > { %v845_v43 = vpack.c.bf16 %v793_v40, %v791_v39 }
 0x1ac   : > { %v846_v44 = vpack.c.bf16 %v794_v42, %v792_v41  ;;  %v672_v45 = vpop.f32.mrb[24].mxu0 }
 0x1ad   : > { %v673_v46 = vadd.f32 %v672_v45, %v1987_v21  ;;  %v674_v47 = vpop.f32.mrb[25].mxu0 }
 0x1ae   : > { %v675_v48 = vadd.f32 %v674_v47, %v1989_v22  ;;  %v676_v49 = vpop.f32.mrb[26].mxu0  ;;  %1074 = vmatprep.mubr.bf16.mxu1 %v846_v44 }
 0x1af   : > { %v677_v50 = vadd.f32 %v676_v49, %v1987_v21  ;;  %v678_v51 = vpop.f32.mrb[27].mxu0  ;;  %1075 = vmatmul.mubr.bf16.gmra.mrb[20].mxu1 %v845_v43  ;;  %v795_v53 = vmax.f32 %v673_v46, 0.0 }
 0x1b0   : > { %v679_v52 = vadd.f32 %v678_v51, %v1989_v22  ;;  %v796_v55 = vmax.f32 %v675_v48, 0.0 }
 0x1b1   : > { %v797_v54 = vmax.f32 %v677_v50, 0.0 }
 0x1b2   : > { %v798_v56 = vmax.f32 %v679_v52, 0.0 }
 0x1b3   : > { %v847_v57 = vpack.c.bf16 %v797_v54, %v795_v53 }
 0x1b4   : > { %v848_v58 = vpack.c.bf16 %v798_v56, %v796_v55  ;;  %v682_v59 = vpop.f32.mrb[28].mxu0 }
 0x1b5   : > { %v683_v60 = vadd.f32 %v682_v59, %v1987_v21  ;;  %v684_v61 = vpop.f32.mrb[29].mxu0 }
 0x1b6   : > { %v685_v62 = vadd.f32 %v684_v61, %v1989_v22  ;;  %v686_v63 = vpop.f32.mrb[30].mxu0  ;;  %1082 = vmatprep.mubr.bf16.mxu1 %v848_v58 }
 0x1b7   : > { %v687_v0 = vadd.f32 %v686_v63, %v1987_v21  ;;  %v688_v1 = vpop.f32.mrb[31].mxu0  ;;  %1083 = vmatmul.mubr.bf16.gmra.mrb[24].mxu1 %v847_v57  ;;  %v799_v3 = vmax.f32 %v683_v60, 0.0 }
 0x1b8   : > { %v689_v2 = vadd.f32 %v688_v1, %v1989_v22  ;;  %v800_v5 = vmax.f32 %v685_v62, 0.0 }
 0x1b9   : > { %v801_v4 = vmax.f32 %v687_v0, 0.0 }
 0x1ba   : > { %v802_v6 = vmax.f32 %v689_v2, 0.0 }
 0x1bb   : > { %v849_v7 = vpack.c.bf16 %v801_v4, %v799_v3 }
 0x1bc   : > { %v850_v8 = vpack.c.bf16 %v802_v6, %v800_v5  ;;  %v692_v9 = vpop.f32.mrb[32].mxu0 }
 0x1bd   : > { %v693_v10 = vadd.f32 %v692_v9, %v1987_v21  ;;  %v694_v11 = vpop.f32.mrb[33].mxu0 }
 0x1be   : > { %v695_v12 = vadd.f32 %v694_v11, %v1989_v22  ;;  %v696_v13 = vpop.f32.mrb[34].mxu0  ;;  %1090 = vmatprep.mubr.bf16.mxu1 %v850_v8 }
 0x1bf   : > { %v697_v14 = vadd.f32 %v696_v13, %v1987_v21  ;;  %v698_v15 = vpop.f32.mrb[35].mxu0  ;;  %1091 = vmatmul.mubr.bf16.gmra.mrb[28].mxu1 %v849_v7  ;;  %v803_v17 = vmax.f32 %v693_v10, 0.0 }
 0x1c0   : > { %v699_v16 = vadd.f32 %v698_v15, %v1989_v22  ;;  %v804_v19 = vmax.f32 %v695_v12, 0.0 }
 0x1c1   : > { %v805_v18 = vmax.f32 %v697_v14, 0.0 }
 0x1c2   : > { %v806_v20 = vmax.f32 %v699_v16, 0.0 }
 0x1c3   : > { %v851_v23 = vpack.c.bf16 %v805_v18, %v803_v17 }
 0x1c4   : > { %v852_v24 = vpack.c.bf16 %v806_v20, %v804_v19  ;;  %v702_v25 = vpop.f32.mrb[36].mxu0 }
 0x1c5   : > { %v703_v26 = vadd.f32 %v702_v25, %v1987_v21  ;;  %v704_v27 = vpop.f32.mrb[37].mxu0 }
 0x1c6   : > { %v705_v28 = vadd.f32 %v704_v27, %v1989_v22  ;;  %v706_v29 = vpop.f32.mrb[38].mxu0  ;;  %1098 = vmatprep.mubr.bf16.mxu1 %v852_v24 }
 0x1c7   : > { %v707_v30 = vadd.f32 %v706_v29, %v1987_v21  ;;  %v708_v31 = vpop.f32.mrb[39].mxu0  ;;  %1099 = vmatmul.mubr.bf16.gmra.mrb[32].mxu1 %v851_v23  ;;  %v807_v33 = vmax.f32 %v703_v26, 0.0 }
 0x1c8   : > { %v709_v32 = vadd.f32 %v708_v31, %v1989_v22  ;;  %v808_v35 = vmax.f32 %v705_v28, 0.0 }
 0x1c9   : > { %v809_v34 = vmax.f32 %v707_v30, 0.0 }
 0x1ca   : > { %v810_v36 = vmax.f32 %v709_v32, 0.0 }
 0x1cb   : > { %v853_v37 = vpack.c.bf16 %v809_v34, %v807_v33 }
 0x1cc   : > { %v854_v38 = vpack.c.bf16 %v810_v36, %v808_v35  ;;  %v712_v39 = vpop.f32.mrb[40].mxu0 }
 0x1cd   : > { %v713_v40 = vadd.f32 %v712_v39, %v1987_v21  ;;  %v714_v41 = vpop.f32.mrb[41].mxu0 }
 0x1ce   : > { %v715_v42 = vadd.f32 %v714_v41, %v1989_v22  ;;  %v716_v43 = vpop.f32.mrb[42].mxu0  ;;  %1106 = vmatprep.mubr.bf16.mxu1 %v854_v38 }
 0x1cf   : > { %v717_v44 = vadd.f32 %v716_v43, %v1987_v21  ;;  %v718_v45 = vpop.f32.mrb[43].mxu0  ;;  %1107 = vmatmul.mubr.bf16.gmra.mrb[36].mxu1 %v853_v37  ;;  %v811_v47 = vmax.f32 %v713_v40, 0.0 }
 0x1d0   : > { %v719_v46 = vadd.f32 %v718_v45, %v1989_v22  ;;  %v812_v49 = vmax.f32 %v715_v42, 0.0 }
 0x1d1   : > { %v813_v48 = vmax.f32 %v717_v44, 0.0 }
 0x1d2   : > { %v814_v50 = vmax.f32 %v719_v46, 0.0 }
 0x1d3   : > { %v855_v51 = vpack.c.bf16 %v813_v48, %v811_v47 }
 0x1d4   : > { %v856_v52 = vpack.c.bf16 %v814_v50, %v812_v49  ;;  %v722_v53 = vpop.f32.mrb[44].mxu0 }
 0x1d5   : > { %v723_v54 = vadd.f32 %v722_v53, %v1987_v21  ;;  %v724_v55 = vpop.f32.mrb[45].mxu0 }
 0x1d6   : > { %v725_v56 = vadd.f32 %v724_v55, %v1989_v22  ;;  %v726_v57 = vpop.f32.mrb[46].mxu0  ;;  %1114 = vmatprep.mubr.bf16.mxu1 %v856_v52 }
 0x1d7   : > { %v727_v58 = vadd.f32 %v726_v57, %v1987_v21  ;;  %v728_v59 = vpop.f32.mrb[47].mxu0  ;;  %1115 = vmatmul.mubr.bf16.gmra.mrb[40].mxu1 %v855_v51  ;;  %v815_v61 = vmax.f32 %v723_v54, 0.0 }
 0x1d8   : > { %v729_v60 = vadd.f32 %v728_v59, %v1989_v22  ;;  %v816_v63 = vmax.f32 %v725_v56, 0.0 }
 0x1d9   : > { %v817_v62 = vmax.f32 %v727_v58, 0.0 }
 0x1da   : > { %v818_v0 = vmax.f32 %v729_v60, 0.0 }
 0x1db   : > { %v857_v1 = vpack.c.bf16 %v817_v62, %v815_v61 }
 0x1dc   : > { %v858_v2 = vpack.c.bf16 %v818_v0, %v816_v63  ;;  %v732_v3 = vpop.f32.mrb[48].mxu0 }
 0x1dd   : > { %v733_v4 = vadd.f32 %v732_v3, %v1987_v21  ;;  %v734_v5 = vpop.f32.mrb[49].mxu0 }
 0x1de   : > { %v735_v6 = vadd.f32 %v734_v5, %v1989_v22  ;;  %v736_v7 = vpop.f32.mrb[50].mxu0  ;;  %1122 = vmatprep.mubr.bf16.mxu1 %v858_v2 }
 0x1df   : > { %v737_v8 = vadd.f32 %v736_v7, %v1987_v21  ;;  %v738_v9 = vpop.f32.mrb[51].mxu0  ;;  %1123 = vmatmul.mubr.bf16.gmra.mrb[44].mxu1 %v857_v1  ;;  %v819_v11 = vmax.f32 %v733_v4, 0.0 }
 0x1e0   : > { %v739_v10 = vadd.f32 %v738_v9, %v1989_v22  ;;  %v820_v13 = vmax.f32 %v735_v6, 0.0 }
 0x1e1   : > { %v821_v12 = vmax.f32 %v737_v8, 0.0 }
 0x1e2   : > { %v822_v14 = vmax.f32 %v739_v10, 0.0 }
 0x1e3   : > { %v859_v15 = vpack.c.bf16 %v821_v12, %v819_v11 }
 0x1e4   : > { %v860_v16 = vpack.c.bf16 %v822_v14, %v820_v13  ;;  %v742_v17 = vpop.f32.mrb[52].mxu0 }
 0x1e5   : > { %v743_v18 = vadd.f32 %v742_v17, %v1987_v21  ;;  %v744_v19 = vpop.f32.mrb[53].mxu0 }
 0x1e6   : > { %v745_v20 = vadd.f32 %v744_v19, %v1989_v22  ;;  %v746_v23 = vpop.f32.mrb[54].mxu0  ;;  %1130 = vmatprep.mubr.bf16.mxu1 %v860_v16 }
 0x1e7   : > { %v747_v24 = vadd.f32 %v746_v23, %v1987_v21  ;;  %v748_v25 = vpop.f32.mrb[55].mxu0  ;;  %1131 = vmatmul.mubr.bf16.gmra.mrb[48].mxu1 %v859_v15  ;;  %v823_v27 = vmax.f32 %v743_v18, 0.0 }
 0x1e8   : > { %v749_v26 = vadd.f32 %v748_v25, %v1989_v22  ;;  %v824_v29 = vmax.f32 %v745_v20, 0.0 }
 0x1e9   : > { %v825_v28 = vmax.f32 %v747_v24, 0.0 }
 0x1ea   : > { %v826_v30 = vmax.f32 %v749_v26, 0.0 }
 0x1eb   : > { %v861_v31 = vpack.c.bf16 %v825_v28, %v823_v27 }
 0x1ec   : > { %v862_v32 = vpack.c.bf16 %v826_v30, %v824_v29  ;;  %v752_v33 = vpop.f32.mrb[56].mxu0 }
 0x1ed   : > { %v753_v34 = vadd.f32 %v752_v33, %v1987_v21  ;;  %v754_v35 = vpop.f32.mrb[57].mxu0 }
 0x1ee   : > { %v755_v36 = vadd.f32 %v754_v35, %v1989_v22  ;;  %v756_v37 = vpop.f32.mrb[58].mxu0  ;;  %1138 = vmatprep.mubr.bf16.mxu1 %v862_v32 }
 0x1ef   : > { %v757_v38 = vadd.f32 %v756_v37, %v1987_v21  ;;  %v758_v39 = vpop.f32.mrb[59].mxu0  ;;  %1139 = vmatmul.mubr.bf16.gmra.mrb[52].mxu1 %v861_v31  ;;  %v827_v41 = vmax.f32 %v753_v34, 0.0 }
 0x1f0   : > { %v759_v40 = vadd.f32 %v758_v39, %v1989_v22  ;;  %v828_v43 = vmax.f32 %v755_v36, 0.0 }
 0x1f1   : > { %v829_v42 = vmax.f32 %v757_v38, 0.0 }
 0x1f2   : > { %v830_v44 = vmax.f32 %v759_v40, 0.0 }
 0x1f3   : > { %v863_v45 = vpack.c.bf16 %v829_v42, %v827_v41 }
 0x1f4   : > { %v864_v46 = vpack.c.bf16 %v830_v44, %v828_v43  ;;  %v762_v47 = vpop.f32.mrb[60].mxu0 }
 0x1f5   : > { %v763_v48 = vadd.f32 %v762_v47, %v1987_v21  ;;  %v764_v49 = vpop.f32.mrb[61].mxu0 }
 0x1f6   : > { %v765_v50 = vadd.f32 %v764_v49, %v1989_v22  ;;  %v766_v51 = vpop.f32.mrb[62].mxu0  ;;  %1146 = vmatprep.mubr.bf16.mxu1 %v864_v46 }
 0x1f7   : > { %v767_v52 = vadd.f32 %v766_v51, %v1987_v21  ;;  %v768_v53 = vpop.f32.mrb[63].mxu0  ;;  %1147 = vmatmul.mubr.bf16.gmra.mrb[56].mxu1 %v863_v45  ;;  %v831_v55 = vmax.f32 %v763_v48, 0.0  ;;  %v2060_v21 = vld [vmem:[%s2180_s4] ss:$0 sm:$0xff] }
 0x1f8   : > { %v769_v54 = vadd.f32 %v768_v53, %v1989_v22  ;;  %v832_v57 = vmax.f32 %v765_v50, 0.0 }
 0x1f9   : > { %v833_v56 = vmax.f32 %v767_v52, 0.0 }
 0x1fa   : > { %v834_v58 = vmax.f32 %v769_v54, 0.0 }
 0x1fb   : > { %v865_v59 = vpack.c.bf16 %v833_v56, %v831_v55 }
 0x1fc   : > { %v866_v60 = vpack.c.bf16 %v834_v58, %v832_v57 }
 0x1fe   : > { %1154 = vmatprep.mubr.bf16.mxu1 %v866_v60 }
 0x1ff   : > { %1155 = vmatmul.mubr.bf16.gmra.mrb[60].mxu1 %v865_v59 }
 0x25a   : > { %v1367_v61 = vpop.f32.mrb[0].mxu1 }
 0x25b   : > { %v1368_v22 = vpop.f32.mrb[1].mxu1 }
 0x25c   : > { %v1369_v62 = vadd.f32 %v1368_v22, %v1367_v61  ;;  %v1370_v63 = vpop.f32.mrb[2].mxu1 }
 0x25d   : > { %v1371_v0 = vpop.f32.mrb[3].mxu1 }
 0x25e   : > { %v1037_v1 = vadd.f32 %v1369_v62, %v2060_v21  ;;  %v1372_v2 = vadd.f32 %v1371_v0, %v1370_v63 }
 0x260   : > { %1164 = vst.msk [vmem:[%s2065_s16] sm:$0xff] %vm1163_vm0, %v1037_v1  ;;  %v1040_v3 = vadd.f32 %v1372_v2, %v2060_v21 }
 0x262   : > { %1165 = vst.msk [vmem:[%s2065_s16 + $0x8] sm:$0xff] %vm1163_vm0, %v1040_v3  ;;  %v1373_v4 = vpop.f32.mrb[4].mxu1 }
 0x263   : > { %v1374_v5 = vpop.f32.mrb[5].mxu1 }
 0x264   : > { %v1375_v6 = vadd.f32 %v1374_v5, %v1373_v4  ;;  %v1376_v7 = vpop.f32.mrb[6].mxu1 }
 0x265   : > { %v1377_v8 = vpop.f32.mrb[7].mxu1 }
 0x266   : > { %v1045_v9 = vadd.f32 %v1375_v6, %v2060_v21  ;;  %v1378_v10 = vadd.f32 %v1377_v8, %v1376_v7 }
 0x268   : > { %1166 = vst.msk [vmem:[%s2065_s16 + $0x10] sm:$0xff] %vm1163_vm0, %v1045_v9  ;;  %v1048_v11 = vadd.f32 %v1378_v10, %v2060_v21 }
 0x26a   : > { %1167 = vst.msk [vmem:[%s2065_s16 + $0x18] sm:$0xff] %vm1163_vm0, %v1048_v11  ;;  %v1379_v12 = vpop.f32.mrb[8].mxu1 }
 0x26b   : > { %v1380_v13 = vpop.f32.mrb[9].mxu1 }
 0x26c   : > { %v1381_v14 = vadd.f32 %v1380_v13, %v1379_v12  ;;  %v1382_v15 = vpop.f32.mrb[10].mxu1 }
 0x26d   : > { %v1383_v16 = vpop.f32.mrb[11].mxu1 }
 0x26e   : > { %v1053_v17 = vadd.f32 %v1381_v14, %v2060_v21  ;;  %v1384_v18 = vadd.f32 %v1383_v16, %v1382_v15 }
 0x270   : > { %1168 = vst.msk [vmem:[%s2065_s16 + $0x20] sm:$0xff] %vm1163_vm0, %v1053_v17  ;;  %v1056_v19 = vadd.f32 %v1384_v18, %v2060_v21 }
 0x272   : > { %1169 = vst.msk [vmem:[%s2065_s16 + $0x28] sm:$0xff] %vm1163_vm0, %v1056_v19  ;;  %v1385_v20 = vpop.f32.mrb[12].mxu1 }
 0x273   : > { %v1386_v23 = vpop.f32.mrb[13].mxu1 }
 0x274   : > { %v1387_v24 = vadd.f32 %v1386_v23, %v1385_v20  ;;  %v1388_v25 = vpop.f32.mrb[14].mxu1 }
 0x275   : > { %v1389_v26 = vpop.f32.mrb[15].mxu1 }
 0x276   : > { %v1061_v27 = vadd.f32 %v1387_v24, %v2060_v21  ;;  %v1390_v28 = vadd.f32 %v1389_v26, %v1388_v25 }
 0x278   : > { %1170 = vst.msk [vmem:[%s2065_s16 + $0x30] sm:$0xff] %vm1163_vm0, %v1061_v27  ;;  %v1064_v29 = vadd.f32 %v1390_v28, %v2060_v21 }
 0x27a   : > { %1171 = vst.msk [vmem:[%s2065_s16 + $0x38] sm:$0xff] %vm1163_vm0, %v1064_v29  ;;  %v1391_v30 = vpop.f32.mrb[16].mxu1 }
 0x27b   : > { %v1392_v31 = vpop.f32.mrb[17].mxu1 }
 0x27c   : > { %v1393_v32 = vadd.f32 %v1392_v31, %v1391_v30  ;;  %v1394_v33 = vpop.f32.mrb[18].mxu1 }
 0x27d   : > { %v1395_v34 = vpop.f32.mrb[19].mxu1 }
 0x27e   : > { %v1069_v35 = vadd.f32 %v1393_v32, %v2060_v21  ;;  %v1396_v36 = vadd.f32 %v1395_v34, %v1394_v33 }
 0x280   : > { %1172 = vst.msk [vmem:[%s2065_s16 + $0x40] sm:$0xff] %vm1163_vm0, %v1069_v35  ;;  %v1072_v37 = vadd.f32 %v1396_v36, %v2060_v21 }
 0x282   : > { %1173 = vst.msk [vmem:[%s2065_s16 + $0x48] sm:$0xff] %vm1163_vm0, %v1072_v37  ;;  %v1397_v38 = vpop.f32.mrb[20].mxu1 }
 0x283   : > { %v1398_v39 = vpop.f32.mrb[21].mxu1 }
 0x284   : > { %v1399_v40 = vadd.f32 %v1398_v39, %v1397_v38  ;;  %v1400_v41 = vpop.f32.mrb[22].mxu1 }
 0x285   : > { %v1401_v42 = vpop.f32.mrb[23].mxu1 }
 0x286   : > { %v1077_v43 = vadd.f32 %v1399_v40, %v2060_v21  ;;  %v1402_v44 = vadd.f32 %v1401_v42, %v1400_v41 }
 0x288   : > { %1174 = vst.msk [vmem:[%s2065_s16 + $0x50] sm:$0xff] %vm1163_vm0, %v1077_v43  ;;  %v1080_v45 = vadd.f32 %v1402_v44, %v2060_v21 }
 0x28a   : > { %1175 = vst.msk [vmem:[%s2065_s16 + $0x58] sm:$0xff] %vm1163_vm0, %v1080_v45  ;;  %v1403_v46 = vpop.f32.mrb[24].mxu1 }
 0x28b   : > { %v1404_v47 = vpop.f32.mrb[25].mxu1 }
 0x28c   : > { %v1405_v48 = vadd.f32 %v1404_v47, %v1403_v46  ;;  %v1406_v49 = vpop.f32.mrb[26].mxu1 }
 0x28d   : > { %v1407_v50 = vpop.f32.mrb[27].mxu1 }
 0x28e   : > { %v1085_v51 = vadd.f32 %v1405_v48, %v2060_v21  ;;  %v1408_v52 = vadd.f32 %v1407_v50, %v1406_v49 }
 0x290   : > { %1176 = vst.msk [vmem:[%s2065_s16 + $0x60] sm:$0xff] %vm1163_vm0, %v1085_v51  ;;  %v1088_v53 = vadd.f32 %v1408_v52, %v2060_v21 }
 0x292   : > { %1177 = vst.msk [vmem:[%s2065_s16 + $0x68] sm:$0xff] %vm1163_vm0, %v1088_v53  ;;  %v1409_v54 = vpop.f32.mrb[28].mxu1 }
 0x293   : > { %v1410_v55 = vpop.f32.mrb[29].mxu1 }
 0x294   : > { %v1411_v56 = vadd.f32 %v1410_v55, %v1409_v54  ;;  %v1412_v57 = vpop.f32.mrb[30].mxu1 }
 0x295   : > { %v1413_v58 = vpop.f32.mrb[31].mxu1 }
 0x296   : > { %v1093_v59 = vadd.f32 %v1411_v56, %v2060_v21  ;;  %v1414_v60 = vadd.f32 %v1413_v58, %v1412_v57 }
 0x298   : > { %1178 = vst.msk [vmem:[%s2065_s16 + $0x70] sm:$0xff] %vm1163_vm0, %v1093_v59  ;;  %v1096_v61 = vadd.f32 %v1414_v60, %v2060_v21 }
 0x29a   : > { %1179 = vst.msk [vmem:[%s2065_s16 + $0x78] sm:$0xff] %vm1163_vm0, %v1096_v61  ;;  %v1415_v22 = vpop.f32.mrb[32].mxu1 }
 0x29b   : > { %v1416_v62 = vpop.f32.mrb[33].mxu1 }
 0x29c   : > { %v1417_v63 = vadd.f32 %v1416_v62, %v1415_v22  ;;  %v1418_v0 = vpop.f32.mrb[34].mxu1 }
 0x29d   : > { %v1419_v1 = vpop.f32.mrb[35].mxu1 }
 0x29e   : > { %v1101_v2 = vadd.f32 %v1417_v63, %v2060_v21  ;;  %v1420_v3 = vadd.f32 %v1419_v1, %v1418_v0 }
 0x2a0   : > { %1180 = vst.msk [vmem:[%s2065_s16 + $0x80] sm:$0xff] %vm1163_vm0, %v1101_v2  ;;  %v1104_v4 = vadd.f32 %v1420_v3, %v2060_v21 }
 0x2a2   : > { %1181 = vst.msk [vmem:[%s2065_s16 + $0x88] sm:$0xff] %vm1163_vm0, %v1104_v4  ;;  %v1421_v5 = vpop.f32.mrb[36].mxu1 }
 0x2a3   : > { %v1422_v6 = vpop.f32.mrb[37].mxu1 }
 0x2a4   : > { %v1423_v7 = vadd.f32 %v1422_v6, %v1421_v5  ;;  %v1424_v8 = vpop.f32.mrb[38].mxu1 }
 0x2a5   : > { %v1425_v9 = vpop.f32.mrb[39].mxu1 }
 0x2a6   : > { %v1109_v10 = vadd.f32 %v1423_v7, %v2060_v21  ;;  %v1426_v11 = vadd.f32 %v1425_v9, %v1424_v8 }
 0x2a8   : > { %1182 = vst.msk [vmem:[%s2065_s16 + $0x90] sm:$0xff] %vm1163_vm0, %v1109_v10  ;;  %v1112_v12 = vadd.f32 %v1426_v11, %v2060_v21 }
 0x2aa   : > { %1183 = vst.msk [vmem:[%s2065_s16 + $0x98] sm:$0xff] %vm1163_vm0, %v1112_v12  ;;  %v1427_v13 = vpop.f32.mrb[40].mxu1 }
 0x2ab   : > { %v1428_v14 = vpop.f32.mrb[41].mxu1 }
 0x2ac   : > { %v1429_v15 = vadd.f32 %v1428_v14, %v1427_v13  ;;  %v1430_v16 = vpop.f32.mrb[42].mxu1 }
 0x2ad   : > { %v1431_v17 = vpop.f32.mrb[43].mxu1 }
 0x2ae   : > { %v1117_v18 = vadd.f32 %v1429_v15, %v2060_v21  ;;  %v1432_v19 = vadd.f32 %v1431_v17, %v1430_v16 }
 0x2b0   : > { %1184 = vst.msk [vmem:[%s2065_s16 + $0xa0] sm:$0xff] %vm1163_vm0, %v1117_v18  ;;  %v1120_v20 = vadd.f32 %v1432_v19, %v2060_v21 }
 0x2b2   : > { %1185 = vst.msk [vmem:[%s2065_s16 + $0xa8] sm:$0xff] %vm1163_vm0, %v1120_v20  ;;  %v1433_v23 = vpop.f32.mrb[44].mxu1 }
 0x2b3   : > { %v1434_v24 = vpop.f32.mrb[45].mxu1 }
 0x2b4   : > { %v1435_v25 = vadd.f32 %v1434_v24, %v1433_v23  ;;  %v1436_v26 = vpop.f32.mrb[46].mxu1 }
 0x2b5   : > { %v1437_v27 = vpop.f32.mrb[47].mxu1 }
 0x2b6   : > { %v1125_v28 = vadd.f32 %v1435_v25, %v2060_v21  ;;  %v1438_v29 = vadd.f32 %v1437_v27, %v1436_v26 }
 0x2b8   : > { %1186 = vst.msk [vmem:[%s2065_s16 + $0xb0] sm:$0xff] %vm1163_vm0, %v1125_v28  ;;  %v1128_v30 = vadd.f32 %v1438_v29, %v2060_v21 }
 0x2ba   : > { %1187 = vst.msk [vmem:[%s2065_s16 + $0xb8] sm:$0xff] %vm1163_vm0, %v1128_v30  ;;  %v1439_v31 = vpop.f32.mrb[48].mxu1 }
 0x2bb   : > { %v1440_v32 = vpop.f32.mrb[49].mxu1 }
 0x2bc   : > { %v1441_v33 = vadd.f32 %v1440_v32, %v1439_v31  ;;  %v1442_v34 = vpop.f32.mrb[50].mxu1 }
 0x2bd   : > { %v1443_v35 = vpop.f32.mrb[51].mxu1 }
 0x2be   : > { %v1133_v36 = vadd.f32 %v1441_v33, %v2060_v21  ;;  %v1444_v37 = vadd.f32 %v1443_v35, %v1442_v34 }
 0x2c0   : > { %1188 = vst.msk [vmem:[%s2065_s16 + $0xc0] sm:$0xff] %vm1163_vm0, %v1133_v36  ;;  %v1136_v38 = vadd.f32 %v1444_v37, %v2060_v21 }
 0x2c2   : > { %1189 = vst.msk [vmem:[%s2065_s16 + $0xc8] sm:$0xff] %vm1163_vm0, %v1136_v38  ;;  %v1445_v39 = vpop.f32.mrb[52].mxu1 }
 0x2c3   : > { %v1446_v40 = vpop.f32.mrb[53].mxu1 }
 0x2c4   : > { %v1447_v41 = vadd.f32 %v1446_v40, %v1445_v39  ;;  %v1448_v42 = vpop.f32.mrb[54].mxu1 }
 0x2c5   : > { %v1449_v43 = vpop.f32.mrb[55].mxu1 }
 0x2c6   : > { %v1141_v44 = vadd.f32 %v1447_v41, %v2060_v21  ;;  %v1450_v45 = vadd.f32 %v1449_v43, %v1448_v42 }
 0x2c8   : > { %1190 = vst.msk [vmem:[%s2065_s16 + $0xd0] sm:$0xff] %vm1163_vm0, %v1141_v44  ;;  %v1144_v46 = vadd.f32 %v1450_v45, %v2060_v21 }
 0x2ca   : > { %1191 = vst.msk [vmem:[%s2065_s16 + $0xd8] sm:$0xff] %vm1163_vm0, %v1144_v46  ;;  %v1451_v47 = vpop.f32.mrb[56].mxu1 }
 0x2cb   : > { %v1452_v48 = vpop.f32.mrb[57].mxu1 }
 0x2cc   : > { %v1453_v49 = vadd.f32 %v1452_v48, %v1451_v47  ;;  %v1454_v50 = vpop.f32.mrb[58].mxu1 }
 0x2cd   : > { %v1455_v51 = vpop.f32.mrb[59].mxu1 }
 0x2ce   : > { %v1149_v52 = vadd.f32 %v1453_v49, %v2060_v21  ;;  %v1456_v53 = vadd.f32 %v1455_v51, %v1454_v50 }
 0x2d0   : > { %1192 = vst.msk [vmem:[%s2065_s16 + $0xe0] sm:$0xff] %vm1163_vm0, %v1149_v52  ;;  %v1152_v54 = vadd.f32 %v1456_v53, %v2060_v21 }
 0x2d2   : > { %1193 = vst.msk [vmem:[%s2065_s16 + $0xe8] sm:$0xff] %vm1163_vm0, %v1152_v54  ;;  %v1457_v55 = vpop.f32.mrb[60].mxu1 }
 0x2d3   : > { %v1458_v56 = vpop.f32.mrb[61].mxu1 }
 0x2d4   : > { %v1459_v57 = vadd.f32 %v1458_v56, %v1457_v55  ;;  %v1460_v58 = vpop.f32.mrb[62].mxu1 }
 0x2d5   : > { %v1461_v59 = vpop.f32.mrb[63].mxu1 }
 0x2d6   : > { %v1157_v60 = vadd.f32 %v1459_v57, %v2060_v21  ;;  %v1462_v61 = vadd.f32 %v1461_v59, %v1460_v58 }
 0x2d8   : > { %1194 = vst.msk [vmem:[%s2065_s16 + $0xf0] sm:$0xff] %vm1163_vm0, %v1157_v60  ;;  %v1160_v22 = vadd.f32 %v1462_v61, %v2060_v21 }
 0x2da   : > { %1195 = vst.msk [vmem:[%s2065_s16 + $0xf8] sm:$0xff] %vm1163_vm0, %v1160_v22 }
 0x2db PF: > { %p16_p6 = scmp.ge.s32.totalorder %s1854_s14, 4   ;;  %s2194_s18 = smov %s1709_s19 }
 0x2dc   : > { %s2195_s19 = smov %s1713_s20  ;;  %s2196_s20 = smov %s1863_s17 }
 0x2dd   : > { %s2197_s21 = smov %s1854_s14  ;;  %18 = sbr.rel (!%p16_p6) target bundleno = 4 (0x4), region = 88 }
 0x2e4   :  { %1218 = vsyncpa [#allocation3], 1 }
 0x2e5   :  { %1220 = vsyncpa [#allocation3 + $0x1], 1 }
 0x2e6   :  { %1221 = vsyncpa [#allocation5], 1 }

</bundles_post_ra>
